<compile_context>
chip_gen: v6e
topology: v6e:2x2x1
jax: 0.10.0
libtpu: 0.0.40
codegen_flags: <defaults>
</compile_context>

<pallas_src>
import jax
import jax.numpy as jnp
from jax.experimental import pallas as pl
from jax.experimental.pallas import tpu as pltpu


def _assemble_kernel(prefix_ref, prompt_ref, templates_ref, suffix_ref, out_ref):
    """One grid step = one block of classes. out block: (C_BLK, seq_len, W).

    Build the whole tile in registers with a single concatenate, then issue one
    contiguous store (avoids masked vst.msk partial stores from 1/n_cnt/T/1-row
    slice writes).  All inputs are cast explicitly to the output dtype so mixed
    prompt/buffer dtypes follow jnp.concatenate promotion semantics.
    """
    dt = out_ref.dtype
    c_blk = out_ref.shape[0]

    prompt = prompt_ref[...].astype(dt)
    if prompt.ndim == 2:
        # Shared (class-agnostic) prompt: broadcast across the class block.
        # Its BlockSpec index_map is constant, so the block stays VMEM-resident
        # across grid steps (no re-DMA) -- do NOT pre-expand in the wrapper.
        prompt = jnp.broadcast_to(prompt[None, :, :], (c_blk,) + prompt.shape)

    out_ref[...] = jnp.concatenate(
        [
            prefix_ref[...].astype(dt),
            prompt,
            templates_ref[...].astype(dt),
            suffix_ref[...].astype(dt),
        ],
        axis=1,
    )


def _choose_class_block(n_cls, seq_len, width, itemsize,
                        vmem_budget_bytes=12 * 1024 * 1024, max_c_blk=512):
    """Pick how many classes to process per grid step.

    VMEM budget: double-buffered inputs (~seq_len rows total across the four
    inputs) + double-buffered output (seq_len rows) per class
    -> ~4 * seq_len * width * itemsize bytes per class.  The budget is kept
    conservative (12 MiB) so it fits the default scoped-VMEM limit on every
    generation (16 MiB v5e / 32 MiB v6e,v7x; v7x has only 64 MiB total VMEM).
    """
    per_class_bytes = 4 * seq_len * width * itemsize
    c_blk = max(1, vmem_budget_bytes // max(1, per_class_bytes))
    c_blk = int(min(c_blk, max_c_blk, n_cls))
    # Keep >= 2 grid steps so both TensorCores on v7x get work.
    if n_cls > 1:
        c_blk = min(c_blk, pl.cdiv(n_cls, 2))
    return max(1, int(c_blk))


def text_prompter_forward(prompt, token_prefix, token_templates, token_suffix):
    """Pallas implementation of Text_Prompter.forward().

    prompt:          (n_cnt, W)  [shared, expanded across classes]  or (n_cls, n_cnt, W)
    token_prefix:    (n_cls, 1, W)
    token_templates: (n_cls, T, W)
    token_suffix:    (n_cls, 1, W)
    returns:         (n_cls, 1 + n_cnt + T + 1, W)  in the promoted dtype
    """
    n_cls, _, width = token_prefix.shape
    t_len = token_templates.shape[1]
    n_cnt = prompt.shape[-2]
    seq_len = 1 + n_cnt + t_len + 1

    # Match torch.cat / jnp.concatenate dtype promotion (e.g. f32 prompt with
    # bf16 frozen CLIP buffers -> f32 output).
    out_dtype = jnp.result_type(prompt.dtype, token_prefix.dtype,
                                token_templates.dtype, token_suffix.dtype)

    c_blk = _choose_class_block(n_cls, seq_len, width,
                                jnp.dtype(out_dtype).itemsize)
    grid = (pl.cdiv(n_cls, c_blk),)

    if prompt.ndim == 2:
        # Shared prompt: constant block index -> one DMA, stays in VMEM.
        prompt_spec = pl.BlockSpec((n_cnt, width), lambda i: (0, 0))
    else:
        prompt_spec = pl.BlockSpec((c_blk, n_cnt, width), lambda i: (i, 0, 0))

    return pl.pallas_call(
        _assemble_kernel,
        out_shape=jax.ShapeDtypeStruct((n_cls, seq_len, width), out_dtype),
        grid=grid,
        in_specs=[
            pl.BlockSpec((c_blk, 1, width), lambda i: (i, 0, 0)),       # token_prefix
            prompt_spec,                                                # prompt
            pl.BlockSpec((c_blk, t_len, width), lambda i: (i, 0, 0)),   # token_templates
            pl.BlockSpec((c_blk, 1, width), lambda i: (i, 0, 0)),       # token_suffix
        ],
        out_specs=pl.BlockSpec((c_blk, seq_len, width), lambda i: (i, 0, 0)),
        compiler_params=pltpu.CompilerParams(dimension_semantics=("parallel",)),
    )(token_prefix, prompt, token_templates, token_suffix)


def _reference_forward(prompt, token_prefix, token_templates, token_suffix):
    n_cls = token_prefix.shape[0]
    if prompt.ndim == 2:
        prompt = jnp.broadcast_to(prompt[None], (n_cls,) + prompt.shape)
    return jnp.concatenate([token_prefix, prompt, token_templates, token_suffix], axis=1)


def _run_case(name, prompt, token_prefix, token_templates, token_suffix):
    out = text_prompter_forward(prompt, token_prefix, token_templates, token_suffix)
    out = jax.block_until_ready(out)
    ref = _reference_forward(prompt, token_prefix, token_templates, token_suffix)
    assert out.shape == ref.shape, (name, out.shape, ref.shape)
    assert out.dtype == ref.dtype, (name, out.dtype, ref.dtype)
    assert jnp.allclose(out.astype(jnp.float32), ref.astype(jnp.float32)), (
        f"{name}: mismatch vs reference concat")


if __name__ == "__main__":
    # Small synthetic shapes consistent with the module's __init__:
    #   n_cls classes, n_cnt learnable context tokens, clip_width embedding dim,
    #   token_templates length T (= context_length - n_cnt - 2 in real CLIP).
    n_cnt, t_len, width = 4, 10, 128

    key = jax.random.PRNGKey(0)
    k_prompt, k_pre, k_tmpl, k_suf, k_cw = jax.random.split(key, 5)

    # TODO(synk): clip.tokenize / clip_model.token_embedding have no Pallas
    # equivalent (string tokenization + frozen embedding lookup done in
    # __init__); their outputs are modeled here as synthetic buffers.

    # Case 1: shared (class-agnostic) prompt, all f32, n_cls divisible by block.
    n_cls = 4
    prompt = (0.02 * jax.random.normal(k_prompt, (n_cnt, width))).astype(jnp.float32)
    token_prefix = jax.random.normal(k_pre, (n_cls, 1, width)).astype(jnp.float32)
    token_templates = jax.random.normal(k_tmpl, (n_cls, t_len, width)).astype(jnp.float32)
    token_suffix = jax.random.normal(k_suf, (n_cls, 1, width)).astype(jnp.float32)
    _run_case("shared_f32", prompt, token_prefix, token_templates, token_suffix)

    # Case 2: class-wise prompt (class_wise_prompt=True), all f32.
    n_cls = 6
    prompt_cw = (0.02 * jax.random.normal(k_cw, (n_cls, n_cnt, width))).astype(jnp.float32)
    token_prefix = jax.random.normal(k_pre, (n_cls, 1, width)).astype(jnp.float32)
    token_templates = jax.random.normal(k_tmpl, (n_cls, t_len, width)).astype(jnp.float32)
    token_suffix = jax.random.normal(k_suf, (n_cls, 1, width)).astype(jnp.float32)
    _run_case("classwise_f32", prompt_cw, token_prefix, token_templates, token_suffix)

    # Case 3: f32 learnable prompt + bf16 frozen CLIP buffers (promotes to f32),
    # with n_cls not divisible by the class block (exercises boundary blocks).
    n_cls = 5
    prompt = (0.02 * jax.random.normal(k_prompt, (n_cnt, width))).astype(jnp.float32)
    token_prefix = jax.random.normal(k_pre, (n_cls, 1, width)).astype(jnp.bfloat16)
    token_templates = jax.random.normal(k_tmpl, (n_cls, t_len, width)).astype(jnp.bfloat16)
    token_suffix = jax.random.normal(k_suf, (n_cls, 1, width)).astype(jnp.bfloat16)
    _run_case("mixed_dtype", prompt, token_prefix, token_templates, token_suffix)

    print("KERNEL_OK")
</pallas_src>

<mosaic_0001>
module attributes {stable_mosaic.version = 11 : i64} {
  func.func @_assemble_kernel(%arg0: i32, %arg1: memref<2x1x128xf32, #tpu.memory_space<vmem>>, %arg2: memref<4x128xf32, #tpu.memory_space<vmem>>, %arg3: memref<2x10x128xf32, #tpu.memory_space<vmem>>, %arg4: memref<2x1x128xf32, #tpu.memory_space<vmem>>, %arg5: memref<2x16x128xf32, #tpu.memory_space<vmem>>) attributes {dimension_semantics = [#tpu.dimension_semantics<parallel>], iteration_bounds = array<i64: 2>, scalar_prefetch = 0 : i64, scratch_operands = 0 : i64, tpu.core_type = #tpu.core_type<tc>, window_params = [{transform_indices = @transform_0, window_bounds = array<i64: 2, 1, 128>}, {pipeline_mode = #tpu.pipeline_mode<synchronous>, transform_indices = @transform_1, window_bounds = array<i64: 4, 128>}, {transform_indices = @transform_2, window_bounds = array<i64: 2, 10, 128>}, {transform_indices = @transform_3, window_bounds = array<i64: 2, 1, 128>}, {transform_indices = @transform_4, window_bounds = array<i64: 2, 16, 128>}]} {
    %c0 = arith.constant 0 : index
    %c0_0 = arith.constant 0 : index
    %0 = vector.load %arg2[%c0, %c0_0] : memref<4x128xf32, #tpu.memory_space<vmem>>, vector<4x128xf32>
    %1 = vector.shape_cast %0 : vector<4x128xf32> to vector<1x4x128xf32>
    %2 = vector.shape_cast %1 : vector<1x4x128xf32> to vector<1x4x128xf32>
    %3 = vector.broadcast %2 : vector<1x4x128xf32> to vector<2x4x128xf32>
    %c0_1 = arith.constant 0 : index
    %c0_2 = arith.constant 0 : index
    %c0_3 = arith.constant 0 : index
    %4 = vector.load %arg1[%c0_1, %c0_2, %c0_3] : memref<2x1x128xf32, #tpu.memory_space<vmem>>, vector<2x1x128xf32>
    %c0_4 = arith.constant 0 : index
    %c0_5 = arith.constant 0 : index
    %c0_6 = arith.constant 0 : index
    %5 = vector.load %arg3[%c0_4, %c0_5, %c0_6] : memref<2x10x128xf32, #tpu.memory_space<vmem>>, vector<2x10x128xf32>
    %c0_7 = arith.constant 0 : index
    %c0_8 = arith.constant 0 : index
    %c0_9 = arith.constant 0 : index
    %6 = vector.load %arg4[%c0_7, %c0_8, %c0_9] : memref<2x1x128xf32, #tpu.memory_space<vmem>>, vector<2x1x128xf32>
    %7 = tpu.concatenate %4, %3, %5, %6 in 1 : vector<2x1x128xf32>, vector<2x4x128xf32>, vector<2x10x128xf32>, vector<2x1x128xf32> -> vector<2x16x128xf32>
    %c0_10 = arith.constant 0 : index
    %c0_11 = arith.constant 0 : index
    %c0_12 = arith.constant 0 : index
    %8 = vector.load %arg5[%c0_10, %c0_11, %c0_12] : memref<2x16x128xf32, #tpu.memory_space<vmem>>, vector<2x16x128xf32>
    tpu.vector_store %arg5[%c0_10, %c0_11, %c0_12], %7 {strides = array<i32>} : memref<2x16x128xf32, #tpu.memory_space<vmem>>, vector<2x16x128xf32>,
    return
  }
  func.func @transform_0(%arg0: i32) -> (i32, i32, i32) {
    %c0_i32 = arith.constant 0 : i32
    %c0_i32_0 = arith.constant 0 : i32
    %c0_i32_1 = arith.constant 0 : i32
    return %arg0, %c0_i32, %c0_i32_0 : i32, i32, i32
  }
  func.func @transform_1(%arg0: i32) -> (i32, i32) {
    %c0_i32 = arith.constant 0 : i32
    %c0_i32_0 = arith.constant 0 : i32
    %c0_i32_1 = arith.constant 0 : i32
    return %c0_i32, %c0_i32_0 : i32, i32
  }
  func.func @transform_2(%arg0: i32) -> (i32, i32, i32) {
    %c0_i32 = arith.constant 0 : i32
    %c0_i32_0 = arith.constant 0 : i32
    %c0_i32_1 = arith.constant 0 : i32
    return %arg0, %c0_i32, %c0_i32_0 : i32, i32, i32
  }
  func.func @transform_3(%arg0: i32) -> (i32, i32, i32) {
    %c0_i32 = arith.constant 0 : i32
    %c0_i32_0 = arith.constant 0 : i32
    %c0_i32_1 = arith.constant 0 : i32
    return %arg0, %c0_i32, %c0_i32_0 : i32, i32, i32
  }
  func.func @transform_4(%arg0: i32) -> (i32, i32, i32) {
    %c0_i32 = arith.constant 0 : i32
    %c0_i32_0 = arith.constant 0 : i32
    %c0_i32_1 = arith.constant 0 : i32
    return %arg0, %c0_i32, %c0_i32_0 : i32, i32, i32
  }
}

</mosaic_0001>

<bundles_post_ra>
// kernel: tpu_custom_call.1
= control target key start
LH: loop header
LB: loop body
LE: loop exit
PB: predicated region body
PF: predicated region fallthrough
CT: control target
= control target key end

     0   :  { %9 = vsyncpa [#allocation3], 0  ;;  %s658_s0 = inlined_call_operand.vmem [shape: f32[4,1,128], index: 0, kind: input, shape index: {}]   ;;  %s659_s1 = inlined_call_operand.vmem [shape: f32[4,128], index: 1, kind: input, shape index: {}]   ;;  %s660_s2 = inlined_call_operand.vmem [shape: f32[4,10,128], index: 2, kind: input, shape index: {}]   ;;  %s661_s3 = inlined_call_operand.vmem [shape: f32[4,1,128], index: 3, kind: input, shape index: {}]   ;;  %s662_s4 = inlined_call_operand.hbm [shape: f32[4,16,128], index: 4, kind: output, shape index: {}]  }
   0x1   :  { %11 = vsyncpa [#allocation3 + $0x1], 0  ;;  %s538_s15 = smov 0   ;;  %s540_s16 = smov 0  }
   0x2   :  { %s542_s17 = smov 0   ;;  %s544_s18 = smov 0  }
   0x3 LB: > { %s559_s19 = sadd.s32 4294967295, %s508_s18   ;;  %s386_s20 = sadd.s32 4294967294, %s508_s18   ;;  %s508_s18 = sphi %s544_s18, %s668_s18   ;;  %s504_s17 = sphi %s542_s17, %s667_s17   ;;  %s500_s16 = sphi %s540_s16, %s666_s16   ;;  %s496_s15 = sphi %s538_s15, %s665_s15  }
   0x4   : > { %s563_s21 = sadd.s32 1, %s508_s18   ;;  %s123_s22 = sadd.s32 1, %s504_s17 }
   0x5   : > { %s120_s23 = ssub.s32 %s508_s18, %s563_s21  ;;  %p133_p0 = scmp.ne.s32.totalorder %s504_s17, %s500_s16 }
   0x6   : > { %p121_p1 = scmp.eq.s32.totalorder %s120_s23, 0  ;;  %p134_p2 = scmp.eq.s32.totalorder %s559_s19, 1 }
   0x7   : > { %p139_p3 = scmp.ne.s32.totalorder %s500_s16, %s496_s15  ;;  %p140_p4 = scmp.eq.s32.totalorder %s386_s20, 1 }
   0x8   : > { %s574_s24 = scalar_select %p121_p1, %s504_s17, %s123_s22  }
   0x9   : > { %p576_p5 = por %p134_p2, %p133_p0  ;;  %p580_p6 = por %p140_p4, %p139_p3 }
   0xa   : > { %p389_p7 = scmp.ge.s32.totalorder %s508_s18, 1  ;;  %p187_p8 = scmp.lt.s32.totalorder %s508_s18, 3 }
   0xc   : > { %p188_p9 = pnand %p389_p7, %p187_p8 }
   0xd   : > { %s219_s27 = sand.u32 (!%p188_p9), 1, %s500_s16   ;;  %s391_s28 = sshll.u32 (!%p188_p9), %s559_s19, 1 }
   0xe   : > { %191 = sbr.rel (%p188_p9) target bundleno = 43 (0x2b), region = 36  ;;  %s390_s5 = sshll.u32 (!%p188_p9), %s219_s27, 5 }
   0xf   : > { %p223_p10 = scmp.lt.s32.totalorder (!%p188_p9), %s391_s28, 3  ;;  %s221_s13 = scalar_lea.vmem (!%p188_p9), [#allocation2], %s390_s5 }
  0x10   : > { %s306_s14 = sshll.u32 (!%p188_p9), %s221_s13, 4  ;;  %s406_s29 = sshll.u32 (!%p188_p9), %s559_s19, 9  ;;  %s606_s14 = int_to_ptr.vmem [resolvable:$true] %s306_s14 }
  0x11   : > { %s612_s30 = scalar_lea.hbm (!%p188_p9), %s662_s4, %s406_s29  ;;  %s618_s5 = scalar_lea.sflag (!%p188_p9), [#allocation3], %s219_s27 }
  0x12   : > { %s448_s6 = scalar_lea.vmem (!%p188_p9), %s606_s14, 512  ;;  %s510_s7 = smov (!%p188_p9), [#allocation2]  }
  0x13   : > { %v240_v0 = vld [vmem:[%s659_s1] sm:$0xf]  ;;  %s670_s28 = smov (!%p223_p10, %s391_s28), 3  ;;  %vm279_vm0 = vcmask 1040384   ;;  %vm256_vm1 = vcmask 1044480   ;;  %vm284_vm2 = vcmask 1046528   ;;  %p449_p11 = scmp.ne.s32.totalorder %s606_s14, %s448_s6 }
  0x14   : > { %v250_v1 = vrot.slane %v240_v0, 7  ;;  %s225_s8 = scalar_lea.vmem %s658_s0, %s670_s28  ;;  %s404_s9 = sshll.u32 %s670_s28, 4 }
  0x15   : > { %s232_s12 = scalar_lea.vmem %s660_s2, %s404_s9  ;;  %v241_v2 = vld [vmem:[%s225_s8] sm:$0x1]  ;;  %v242_v3 = vld [vmem:[%s225_s8 + $0x1] sm:$0x1]  ;;  %s237_s23 = scalar_lea.vmem %s661_s3, %s670_s28 }
  0x16   : > { %v243_v4 = vld [vmem:[%s232_s12] sm:$0xff]  ;;  %v280_v5 = vsel %vm279_vm0, %v241_v2, %v250_v1  ;;  %v244_v6 = vld [vmem:[%s232_s12 + $0x8] sm:$0x3]  ;;  %v245_v7 = vld [vmem:[%s232_s12 + $0x10] sm:$0xff]  ;;  %v281_v8 = vsel %vm279_vm0, %v242_v3, %v250_v1  ;;  %p450_p12 = pnand %p449_p11, %p576_p5  ;;  %s452_s8 = sshll.u32 %s510_s7, 4  ;;  %s453_s8 = int_to_ptr.vmem [resolvable:$false] %s452_s8 }
  0x17   : > { %v257_v9 = vrot.slane %v243_v4, 3  ;;  %v396_v10 = vld [vmem:[%s237_s23] ss:$0 sm:$0xff]  ;;  %v258_v11 = vrot.slane %v244_v6, 3  ;;  %v260_v12 = vrot.slane %v245_v7, 3  ;;  %s454_s9 = scalar_lea.vmem %s453_s8, 1024  ;;  %p455_p0 = scmp.lt.s32.totalorder %s606_s14, %s453_s8 }
  0x18   : > { %v246_v13 = vld [vmem:[%s232_s12 + $0x18] sm:$0x3]  ;;  %v397_v17 = vld [vmem:[%s237_s23 + $0x1] ss:$0 sm:$0xff]  ;;  %p451_p13 = pneg %p450_p12  ;;  %p456_p1 = scmp.lt.s32.totalorder %s454_s9, %s448_s6 }
  0x19   : > { %v282_v14 = vsel %vm256_vm1, %v280_v5, %v257_v9  ;;  %v259_v15 = vsel %vm256_vm1, %v257_v9, %v258_v11  ;;  %v283_v16 = vsel %vm256_vm1, %v281_v8, %v260_v12  ;;  %v261_v18 = vrot.slane %v246_v13, 3 }
  0x1a   : > { %287 = vst [vmem:[%s221_s13] sm:$0xff] %v282_v14  ;;  %v285_v19 = vsel %vm284_vm2, %v259_v15, %v396_v10  ;;  %289 = vst [vmem:[%s221_s13 + $0x10] sm:$0xff] %v283_v16  ;;  %p457_p2 = por %p456_p1, %p455_p0 }
  0x1b   : > { %288 = vst [vmem:[%s221_s13 + $0x8] sm:$0xff] %v285_v19  ;;  %v262_v20 = vsel %vm256_vm1, %v260_v12, %v261_v18 }
  0x1c   : > { %v286_v21 = vsel %vm284_vm2, %v262_v20, %v397_v17  ;;  %p458_p3 = pnand %p457_p2, %p451_p13 }
  0x1d   : > { %290 = vst [vmem:[%s221_s13 + $0x18] sm:$0xff] %v286_v21 }
  0x1e   : > { %461 = shalt.err (!%p458_p3)
}
  0x1f   : > { %s462_s27 = scalar_lea.hbm %s612_s30, 512  ;;  %s466_s12 = scalar_lea.hbm %s662_s4, 1024 }
  0x20   : > { %p463_p4 = scmp.ne.s32.totalorder %s612_s30, %s462_s27  ;;  %p467_p9 = scmp.lt.s32.totalorder %s612_s30, %s662_s4 }
  0x21   : > { %p468_p10 = scmp.lt.s32.totalorder %s466_s12, %s462_s27 }
  0x22   : > { %p464_p7 = pnand %p463_p4, %p576_p5 }
  0x23   : > { %p469_p11 = por %p468_p10, %p467_p9 }
  0x24   : > { %p465_p8 = pneg %p464_p7 }
  0x26   : > { %p470_p12 = pnand %p469_p11, %p465_p8 }
  0x28   : > { %473 = shalt.err (!%p470_p12)
}
  0x29   : > { %s511_s22 = smov 128   ;;  %s512_s23 = smov 8  }
  0x2a   : > { %407 = dma.vmem_to_hbm [thread:$0]  (%p576_p5), %s606_s14, 512, %s612_s30, %s618_s5, %s511_s22, %s511_s22, %s512_s23  }
  0x2b PF: > { %p413_p13 = scmp.ge.s32.totalorder %s508_s18, 2  ;;  %s321_s29 = sand.u32 1, %s496_s15  }
  0x2c   : > { %s322_s19 = scalar_lea.sflag [#allocation3], %s321_s29 }
  0x2d   : > { %p410_p0 = pnand %p413_p13, %p580_p6 }
  0x2f   : > { %p411_p1 = pneg %p410_p0 }
  0x31   : > { %491 = dma.done.wait (%p411_p1), %s322_s19, 512  }
  0x32   : > { %493 = vsyncadd (%p411_p1), %s322_s19, 4294966784  ;;  %p14_p2 = scmp.ge.s32.totalorder %s563_s21, 4   ;;  %s665_s15 = smov %s500_s16 }
  0x33   : > { %s666_s16 = smov %s504_s17  ;;  %s667_s17 = smov %s574_s24 }
  0x34   : > { %s668_s18 = smov %s563_s21  ;;  %16 = sbr.rel (!%p14_p2) target bundleno = 3 (0x3), region = 77 }
  0x39   :  { %327 = vsyncpa [#allocation3], 1 }
  0x3a   :  { %329 = vsyncpa [#allocation3 + $0x1], 1 }

</bundles_post_ra>
